<compile_context>
chip_gen: v6e
topology: v6e:2x2x1
jax: 0.10.0
libtpu: 0.0.40
codegen_flags: <defaults>
</compile_context>

<pallas_src>
import functools

import jax
import jax.numpy as jnp
import numpy as np
from jax.experimental import pallas as pl
from jax.experimental.pallas import tpu as pltpu


# ----------------------------- helpers --------------------------------------

def _round_up(x, m):
    return ((x + m - 1) // m) * m


def _pick_tile(dim, pref, align):
    """Largest multiple of `align` <= pref that divides dim, else the full dim."""
    if dim <= pref:
        return dim
    t = (pref // align) * align
    while t >= align:
        if dim % t == 0:
            return t
        t -= align
    return dim


# ----------------------------- matmul kernel --------------------------------

def _matmul_kernel(x_ref, w_ref, o_ref, acc_ref):
    @pl.when(pl.program_id(2) == 0)
    def _():
        acc_ref[...] = jnp.zeros(acc_ref.shape, acc_ref.dtype)

    acc_ref[...] += jnp.dot(x_ref[...], w_ref[...],
                            preferred_element_type=jnp.float32)

    @pl.when(pl.program_id(2) == pl.num_programs(2) - 1)
    def _():
        o_ref[...] = acc_ref[...].astype(o_ref.dtype)


def linear_no_bias(x2d, wt, *, tm=256, tn=512, tk=512):
    """y = x2d @ wt with x2d (M, K) and wt (K, N) (weights pre-transposed)."""
    M, K = x2d.shape
    K2, N = wt.shape
    assert K == K2
    tm = min(tm, _round_up(M, 8))
    Mp = _round_up(M, tm)
    if Mp != M:
        x2d = jnp.pad(x2d, ((0, Mp - M), (0, 0)))
    tn = _pick_tile(N, tn, 128)
    tk = _pick_tile(K, tk, 128)

    out = pl.pallas_call(
        _matmul_kernel,
        out_shape=jax.ShapeDtypeStruct((Mp, N), x2d.dtype),
        grid=(Mp // tm, N // tn, K // tk),
        in_specs=[
            pl.BlockSpec((tm, tk), lambda i, j, k: (i, k)),
            pl.BlockSpec((tk, tn), lambda i, j, k: (k, j)),
        ],
        out_specs=pl.BlockSpec((tm, tn), lambda i, j, k: (i, j)),
        scratch_shapes=[pltpu.VMEM((tm, tn), jnp.float32)],
        compiler_params=pltpu.CompilerParams(
            dimension_semantics=("parallel", "parallel", "arbitrary")),
    )(x2d, wt)
    return out[:M] if Mp != M else out


# --------------------- fused rotary(K) + KV-cache scatter --------------------

def _kv_update_kernel(idx_ref, xk_ref, xv_ref, cos_ref, sin_ref,
                      k_in_ref, v_in_ref, k_out_ref, v_out_ref, *, head_dim):
    del idx_ref, k_in_ref, v_in_ref   # aliased caches: only written, never read
    t = pl.program_id(0)
    dh = head_dim
    xk = xk_ref[...].astype(jnp.float32)                 # (B, Hkv, Dh)
    c = cos_ref[pl.ds(t, 1), :][:, None, :]              # (1, 1, Dh//2)
    s = sin_ref[pl.ds(t, 1), :][:, None, :]
    x1 = xk[..., : dh // 2]
    x2 = xk[..., dh // 2:]
    k_rot = jnp.concatenate([x1 * c - x2 * s, x1 * s + x2 * c], axis=-1)
    k_out_ref[...] = k_rot.astype(k_out_ref.dtype)
    v_out_ref[...] = xv_ref[...]


def update_kv_cache(xk, xv, cos, sin, kv_write_indices, k_cache, v_cache):
    """rotary(K) + index_copy_ into the caches, aliased in place (no full copy)."""
    B, T, Hkv, Dh = xk.shape
    kernel = functools.partial(_kv_update_kernel, head_dim=Dh)
    row_in_spec = pl.BlockSpec((B, None, Hkv, Dh), lambda t, idx: (0, t, 0, 0))
    cache_spec = pl.BlockSpec((B, None, Hkv, Dh), lambda t, idx: (0, idx[t], 0, 0))
    tab_spec = pl.BlockSpec(cos.shape, lambda t, idx: (0, 0))
    return pl.pallas_call(
        kernel,
        out_shape=(jax.ShapeDtypeStruct(k_cache.shape, k_cache.dtype),
                   jax.ShapeDtypeStruct(v_cache.shape, v_cache.dtype)),
        grid_spec=pltpu.PrefetchScalarGridSpec(
            num_scalar_prefetch=1,
            grid=(T,),
            in_specs=[row_in_spec, row_in_spec, tab_spec, tab_spec,
                      cache_spec, cache_spec],
            out_specs=(cache_spec, cache_spec),
        ),
        # operand order: (indices, xk, xv, cos, sin, k_cache, v_cache);
        # alias indices count the scalar-prefetch operand.
        input_output_aliases={5: 0, 6: 1},
        compiler_params=pltpu.CompilerParams(
            dimension_semantics=("arbitrary",)),
    )(kv_write_indices, xk, xv, cos, sin, k_cache, v_cache)


# ---------------- fused rotary(Q) + flash GQA attention kernel ---------------

def _attn_kernel(q_ref, k_ref, v_ref, mask_ref, cos_ref, sin_ref, o_ref,
                 qrot_scr, m_scr, l_scr, acc_scr, *, scale, nq, nkv, head_dim):
    s_idx = pl.program_id(2)
    dh = head_dim
    num_heads = nkv * nq

    @pl.when(s_idx == 0)
    def _init():
        # rotary + softmax scale folded into q, computed once per (b, T-tile)
        c = cos_ref[...]
        s = sin_ref[...]
        for h in range(num_heads):
            qh = q_ref[:, h * dh:(h + 1) * dh].astype(jnp.float32)
            q1 = qh[:, : dh // 2]
            q2 = qh[:, dh // 2:]
            qrot_scr[:, h * dh:(h + 1) * dh] = (
                jnp.concatenate([q1 * c - q2 * s, q1 * s + q2 * c], axis=-1)
                * scale)
        m_scr[...] = jnp.full(m_scr.shape, -jnp.inf, m_scr.dtype)
        l_scr[...] = jnp.zeros(l_scr.shape, l_scr.dtype)
        acc_scr[...] = jnp.zeros(acc_scr.shape, acc_scr.dtype)

    mask = mask_ref[...].astype(jnp.float32)             # (tT, tS)

    for g in range(nkv):                                  # each K/V tile read once
        k = k_ref[:, g * dh:(g + 1) * dh].astype(jnp.float32)   # (tS, Dh)
        v = v_ref[:, g * dh:(g + 1) * dh]                        # (tS, Dh)
        for j in range(nq):                               # query heads sharing it
            h = g * nq + j
            qh = qrot_scr[:, h * dh:(h + 1) * dh]         # (tT, Dh) f32
            sc = jax.lax.dot_general(
                qh, k, (((1,), (1,)), ((), ())),
                preferred_element_type=jnp.float32) + mask          # (tT, tS)
            m_prev = m_scr[:, h:h + 1]
            m_new = jnp.maximum(m_prev, jnp.max(sc, axis=-1, keepdims=True))
            alpha = jnp.exp(m_prev - m_new)
            p = jnp.exp(sc - m_new)
            l_scr[:, h:h + 1] = alpha * l_scr[:, h:h + 1] + jnp.sum(
                p, axis=-1, keepdims=True)
            acc_scr[:, h * dh:(h + 1) * dh] = (
                alpha * acc_scr[:, h * dh:(h + 1) * dh]
                + jnp.dot(p.astype(v.dtype), v,
                          preferred_element_type=jnp.float32))
            m_scr[:, h:h + 1] = m_new

    @pl.when(s_idx == pl.num_programs(2) - 1)
    def _fin():
        for h in range(num_heads):
            inv_l = pl.reciprocal(l_scr[:, h:h + 1], approx=True)
            o_ref[:, h * dh:(h + 1) * dh] = (
                acc_scr[:, h * dh:(h + 1) * dh] * inv_l).astype(o_ref.dtype)


def gqa_flash_attention(q, k_cache2d, v_cache2d, mask, cos, sin, *,
                        scale, num_kv_heads, num_queries_per_kv, head_dim,
                        tq=256, ts=512):
    """q: (B, T, H*Dh); k/v cache views: (B, S, Hkv*Dh); mask: (B, 1, T, S)."""
    B, T, QD = q.shape
    _, S, KD = k_cache2d.shape
    nq, nkv, Dh = num_queries_per_kv, num_kv_heads, head_dim
    tT = _pick_tile(T, tq, 8)
    tS = _pick_tile(S, ts, 128)
    kernel = functools.partial(_attn_kernel, scale=scale, nq=nq, nkv=nkv,
                               head_dim=Dh)
    return pl.pallas_call(
        kernel,
        out_shape=jax.ShapeDtypeStruct((B, T, QD), q.dtype),
        grid=(B, T // tT, S // tS),
        in_specs=[
            pl.BlockSpec((None, tT, QD), lambda b, ti, si: (b, ti, 0)),     # q
            pl.BlockSpec((None, tS, KD), lambda b, ti, si: (b, si, 0)),     # k cache
            pl.BlockSpec((None, tS, KD), lambda b, ti, si: (b, si, 0)),     # v cache
            pl.BlockSpec((None, None, tT, tS),
                         lambda b, ti, si: (b, 0, ti, si)),                 # mask
            pl.BlockSpec((tT, Dh // 2), lambda b, ti, si: (ti, 0)),         # cos
            pl.BlockSpec((tT, Dh // 2), lambda b, ti, si: (ti, 0)),         # sin
        ],
        out_specs=pl.BlockSpec((None, tT, QD), lambda b, ti, si: (b, ti, 0)),
        scratch_shapes=[
            pltpu.VMEM((tT, QD), jnp.float32),            # rotated + scaled q
            pltpu.VMEM((tT, nkv * nq), jnp.float32),      # running max m
            pltpu.VMEM((tT, nkv * nq), jnp.float32),      # running sum l
            pltpu.VMEM((tT, QD), jnp.float32),            # output accumulator
        ],
        compiler_params=pltpu.CompilerParams(
            dimension_semantics=("parallel", "parallel", "arbitrary")),
    )(q, k_cache2d, v_cache2d, mask, cos, sin)


# --------------------------- Module (JAX wrapper) ----------------------------

class GemmaAttentionPallas:
    """world_size=1, rank=0, quant=False version of GemmaAttention."""

    def __init__(self, hidden_size, num_heads, num_kv_heads, head_dim, key):
        self.num_heads = num_heads
        self.num_kv_heads = num_kv_heads
        assert num_heads % num_kv_heads == 0
        self.num_queries_per_kv = num_heads // num_kv_heads
        self.hidden_size = hidden_size
        self.head_dim = head_dim
        self.q_size = num_heads * head_dim
        self.kv_size = num_kv_heads * head_dim
        self.scaling = head_dim ** (-0.5)

        k1, k2 = jax.random.split(key)
        qkv_out = (num_heads + 2 * num_kv_heads) * head_dim
        # Weights stored pre-transposed (in_features, out_features): no
        # per-call HBM transpose before the matmul kernels.
        self.w_qkv_t = 0.02 * jax.random.normal(
            k1, (hidden_size, qkv_out), jnp.float32)
        self.w_o_t = 0.02 * jax.random.normal(
            k2, (num_heads * head_dim, hidden_size), jnp.float32)

    def __call__(self, hidden_states, cos, sin, kv_write_indices, kv_cache, mask):
        B, T, _ = hidden_states.shape
        Hkv, Dh = self.num_kv_heads, self.head_dim

        # qkv projection (tiled Pallas matmul)
        x2d = hidden_states.reshape(B * T, self.hidden_size)
        qkv = linear_no_bias(x2d, self.w_qkv_t).reshape(B, T, -1)
        xq = qkv[..., : self.q_size]                                     # (B, T, H*Dh)
        xk = qkv[..., self.q_size:self.q_size + self.kv_size].reshape(B, T, Hkv, Dh)
        xv = qkv[..., self.q_size + self.kv_size:].reshape(B, T, Hkv, Dh)

        # rotary(K) + KV cache scatter (aliased, in place)
        k_cache, v_cache = kv_cache
        k_cache, v_cache = update_kv_cache(xk, xv, cos, sin, kv_write_indices,
                                           k_cache, v_cache)

        # rotary(Q) fused into flash attention over the cache; the kernel
        # indexes the native cache layout and writes (B, T, H*Dh) directly.
        attn = gqa_flash_attention(
            xq,
            k_cache.reshape(B, -1, Hkv * Dh),
            v_cache.reshape(B, -1, Hkv * Dh),
            mask, cos, sin,
            scale=self.scaling,
            num_kv_heads=Hkv,
            num_queries_per_kv=self.num_queries_per_kv,
            head_dim=Dh)                                                 # (B, T, H*Dh)

        # output projection (tiled Pallas matmul), no transpose needed
        out = linear_no_bias(attn.reshape(B * T, self.q_size), self.w_o_t)
        return out.reshape(B, T, self.hidden_size), (k_cache, v_cache)


# ----------------------------- pure-JAX reference ----------------------------

def reference_forward(mod, x, cos, sin, kv_write_indices, kv_cache, mask):
    B, T, _ = x.shape
    qkv = jnp.einsum("btk,kn->btn", x, mod.w_qkv_t)
    xq = qkv[..., :mod.q_size].reshape(B, T, mod.num_heads, mod.head_dim)
    xk = qkv[..., mod.q_size:mod.q_size + mod.kv_size].reshape(
        B, T, mod.num_kv_heads, mod.head_dim)
    xv = qkv[..., mod.q_size + mod.kv_size:].reshape(
        B, T, mod.num_kv_heads, mod.head_dim)

    def rot(x_bthd):
        xt = x_bthd.transpose(0, 2, 1, 3)
        d = xt.shape[-1]
        x1, x2 = xt[..., : d // 2], xt[..., d // 2:]
        c, s = cos[None, None], sin[None, None]
        out = jnp.concatenate([x1 * c - x2 * s, x1 * s + x2 * c], axis=-1)
        return out.transpose(0, 2, 1, 3)

    xq = rot(xq)
    xk = rot(xk)
    k_cache, v_cache = kv_cache
    k_cache = k_cache.at[:, kv_write_indices].set(xk)
    v_cache = v_cache.at[:, kv_write_indices].set(xv)
    key = jnp.repeat(k_cache, mod.num_queries_per_kv, axis=2)
    value = jnp.repeat(v_cache, mod.num_queries_per_kv, axis=2)
    q = xq.transpose(0, 2, 1, 3)
    k = key.transpose(0, 2, 1, 3)
    v = value.transpose(0, 2, 1, 3)
    scores = jnp.einsum("bhtd,bhsd->bhts", q, k) * mod.scaling + mask
    p = jax.nn.softmax(scores.astype(jnp.float32), axis=-1)
    o = jnp.einsum("bhts,bhsd->bhtd", p, v)
    o = o.transpose(0, 2, 1, 3).reshape(B, T, -1)
    out = jnp.einsum("btn,nh->bth", o, mod.w_o_t)
    return out, (k_cache, v_cache)


# ---------------------------------- main ------------------------------------

if __name__ == "__main__":
    B, T, S = 2, 8, 16
    hidden_size, num_heads, num_kv_heads, head_dim = 32, 4, 2, 16

    root = jax.random.PRNGKey(0)
    k_w, k_x, k_kc, k_vc = jax.random.split(root, 4)

    module = GemmaAttentionPallas(hidden_size, num_heads, num_kv_heads, head_dim, k_w)

    hidden_states = jax.random.normal(k_x, (B, T, hidden_size), jnp.float32)

    # rotary tables (freqs_cis real/imag parts), shape (T, head_dim // 2)
    pos = jnp.arange(T, dtype=jnp.float32)
    inv_freq = 1.0 / (
        10000.0 ** (jnp.arange(0, head_dim, 2, dtype=jnp.float32) / head_dim))
    angles = pos[:, None] * inv_freq[None, :]
    cos, sin = jnp.cos(angles), jnp.sin(angles)

    kv_write_indices = jnp.arange(T, dtype=jnp.int32)
    # non-zero initial caches so the aliased scatter (untouched rows preserved)
    # is actually verified.
    k_cache = 0.1 * jax.random.normal(k_kc, (B, S, num_kv_heads, head_dim), jnp.float32)
    v_cache = 0.1 * jax.random.normal(k_vc, (B, S, num_kv_heads, head_dim), jnp.float32)

    # causal mask over the cache, (B, 1, T, S): 0 where allowed, large negative otherwise
    ii = jnp.arange(T)[:, None]
    jj = jnp.arange(S)[None, :]
    mask2d = jnp.where(jj <= ii, 0.0, -1e9).astype(jnp.float32)
    mask = jnp.broadcast_to(mask2d[None, None], (B, 1, T, S))

    out, (new_k, new_v) = module(hidden_states, cos, sin, kv_write_indices,
                                 (k_cache, v_cache), mask)
    out = jax.block_until_ready(out)

    ref_out, (ref_k, ref_v) = reference_forward(
        module, hidden_states, cos, sin, kv_write_indices, (k_cache, v_cache), mask)

    np.testing.assert_allclose(np.asarray(out), np.asarray(ref_out), rtol=2e-3, atol=2e-3)
    np.testing.assert_allclose(np.asarray(new_k), np.asarray(ref_k), rtol=2e-3, atol=2e-3)
    np.testing.assert_allclose(np.asarray(new_v), np.asarray(ref_v), rtol=2e-3, atol=2e-3)

    print("KERNEL_OK")
</pallas_src>

<mosaic_0001>
module attributes {stable_mosaic.version = 11 : i64} {
  func.func @_matmul_kernel(%arg0: i32, %arg1: i32, %arg2: i32, %arg3: memref<16x32xf32, #tpu.memory_space<vmem>>, %arg4: memref<32x128xf32, #tpu.memory_space<vmem>>, %arg5: memref<16x128xf32, #tpu.memory_space<vmem>>, %arg6: memref<16x128xf32, #tpu.memory_space<vmem>>) attributes {dimension_semantics = [#tpu.dimension_semantics<parallel>, #tpu.dimension_semantics<parallel>, #tpu.dimension_semantics<arbitrary>], iteration_bounds = array<i64: 1, 1, 1>, scalar_prefetch = 0 : i64, scratch_operands = 1 : i64, tpu.core_type = #tpu.core_type<tc>, window_params = [{transform_indices = @transform_0, window_bounds = array<i64: 16, 32>}, {transform_indices = @transform_1, window_bounds = array<i64: 32, 128>}, {transform_indices = @transform_2, window_bounds = array<i64: 16, 128>}]} {
    %c0_i32 = arith.constant 0 : i32
    %0 = arith.cmpi eq, %arg2, %c0_i32 : i32
    %1 = arith.extui %0 : i1 to i32
    %c0_i32_0 = arith.constant 0 : i32
    %2 = arith.cmpi ne, %1, %c0_i32_0 : i32
    scf.if %2 {
      %cst_10 = arith.constant 0.000000e+00 : f32
      %12 = vector.broadcast %cst_10 : f32 to vector<16x128xf32>
      %c0_11 = arith.constant 0 : index
      %c0_12 = arith.constant 0 : index
      %13 = vector.load %arg6[%c0_11, %c0_12] : memref<16x128xf32, #tpu.memory_space<vmem>>, vector<16x128xf32>
      tpu.vector_store %arg6[%c0_11, %c0_12], %12 {strides = array<i32>} : memref<16x128xf32, #tpu.memory_space<vmem>>, vector<16x128xf32>,
    } else {
    }
    %c0 = arith.constant 0 : index
    %c0_1 = arith.constant 0 : index
    %3 = vector.load %arg6[%c0, %c0_1] : memref<16x128xf32, #tpu.memory_space<vmem>>, vector<16x128xf32>
    %c0_2 = arith.constant 0 : index
    %c0_3 = arith.constant 0 : index
    %4 = vector.load %arg3[%c0_2, %c0_3] : memref<16x32xf32, #tpu.memory_space<vmem>>, vector<16x32xf32>
    %c0_4 = arith.constant 0 : index
    %c0_5 = arith.constant 0 : index
    %5 = vector.load %arg4[%c0_4, %c0_5] : memref<32x128xf32, #tpu.memory_space<vmem>>, vector<32x128xf32>
    %cst = arith.constant dense<0.000000e+00> : vector<16x128xf32>
    %6 = tpu.matmul %4, %5, %cst {dimension_numbers = #tpu.dot_dimension_numbers<[1], [0], [0], [1], [0, 0, 1, 1], [], []>} : vector<16x32xf32>, vector<32x128xf32>, vector<16x128xf32> -> vector<16x128xf32>
    %7 = arith.addf %3, %6 : vector<16x128xf32>
    %c0_6 = arith.constant 0 : index
    %c0_7 = arith.constant 0 : index
    %8 = vector.load %arg6[%c0_6, %c0_7] : memref<16x128xf32, #tpu.memory_space<vmem>>, vector<16x128xf32>
    tpu.vector_store %arg6[%c0_6, %c0_7], %7 {strides = array<i32>} : memref<16x128xf32, #tpu.memory_space<vmem>>, vector<16x128xf32>,
    %c0_i32_8 = arith.constant 0 : i32
    %9 = arith.cmpi eq, %arg2, %c0_i32_8 : i32
    %10 = arith.extui %9 : i1 to i32
    %c0_i32_9 = arith.constant 0 : i32
    %11 = arith.cmpi ne, %10, %c0_i32_9 : i32
    scf.if %11 {
      %c0_10 = arith.constant 0 : index
      %c0_11 = arith.constant 0 : index
      %12 = vector.load %arg6[%c0_10, %c0_11] : memref<16x128xf32, #tpu.memory_space<vmem>>, vector<16x128xf32>
      %c0_12 = arith.constant 0 : index
      %c0_13 = arith.constant 0 : index
      %13 = vector.load %arg5[%c0_12, %c0_13] : memref<16x128xf32, #tpu.memory_space<vmem>>, vector<16x128xf32>
      tpu.vector_store %arg5[%c0_12, %c0_13], %12 {strides = array<i32>} : memref<16x128xf32, #tpu.memory_space<vmem>>, vector<16x128xf32>,
    } else {
    }
    return
  }
  func.func @transform_0(%arg0: i32, %arg1: i32, %arg2: i32) -> (i32, i32) {
    %c0_i32 = arith.constant 0 : i32
    return %arg0, %arg2 : i32, i32
  }
  func.func @transform_1(%arg0: i32, %arg1: i32, %arg2: i32) -> (i32, i32) {
    %c0_i32 = arith.constant 0 : i32
    return %arg2, %arg1 : i32, i32
  }
  func.func @transform_2(%arg0: i32, %arg1: i32, %arg2: i32) -> (i32, i32) {
    %c0_i32 = arith.constant 0 : i32
    return %arg0, %arg1 : i32, i32
  }
}

</mosaic_0001>

<bundles_post_ra>
// kernel: tpu_custom_call.1
= control target key start
LH: loop header
LB: loop body
LE: loop exit
PB: predicated region body
PF: predicated region fallthrough
CT: control target
= control target key end

     0   :  { %7 = vsyncpa [#allocation4], 0  ;;  %s295_s0 = inlined_call_operand.hbm [shape: f32[16,32], index: 0, kind: input, shape index: {}]   ;;  %s296_s1 = inlined_call_operand.hbm [shape: f32[32,128], index: 1, kind: input, shape index: {}]   ;;  %s297_s2 = inlined_call_operand.hbm [shape: f32[16,128], index: 2, kind: output, shape index: {}]  }
   0x1   :  { %8 = vsyncpa [#allocation7], 0 }
   0x2   :  { %9 = vsyncpa [#allocation5], 0  ;;  %s255_s9 = smov [#allocation3]  }
   0x3   :  { %s15_s10 = sshll.u32 %s255_s9, 4  ;;  %s16_s10 = int_to_ptr.vmem [resolvable:$true] %s15_s10 }
   0x4   :  { %s197_s11 = scalar_lea.vmem %s16_s10, 256  ;;  %p202_p1 = scmp.lt.s32.totalorder %s16_s10, %s16_s10 }
   0x5   :  { %p198_p0 = scmp.ne.s32.totalorder %s16_s10, %s197_s11  ;;  %p203_p2 = scmp.lt.s32.totalorder %s197_s11, %s197_s11 }
   0x7   :  { %p204_p3 = por %p203_p2, %p202_p1 }
   0x9   :  { %p205_p4 = pnand %p204_p3, %p198_p0 }
   0xb   :  { %208 = shalt.err (!%p205_p4)
}
   0xc   :  { %s256_s12 = smov 128   ;;  %s257_s13 = smov 8  }
   0xd   :  { %21 = dma.hbm_to_vmem [thread:$0]  %s295_s0, 256, %s16_s10, [#allocation4], %s256_s12, %s256_s12, %s257_s13  }
   0xe   :  { %s258_s16 = smov [#allocation6]  }
   0xf   :  { %s27_s17 = sshll.u32 %s258_s16, 4  ;;  %s28_s17 = int_to_ptr.vmem [resolvable:$true] %s27_s17 }
  0x10   :  { %s217_s18 = scalar_lea.vmem %s28_s17, 512  ;;  %p222_p6 = scmp.lt.s32.totalorder %s28_s17, %s28_s17 }
  0x11   :  { %p218_p5 = scmp.ne.s32.totalorder %s28_s17, %s217_s18  ;;  %p223_p7 = scmp.lt.s32.totalorder %s217_s18, %s217_s18 }
  0x13   :  { %p224_p8 = por %p223_p7, %p222_p6 }
  0x15   :  { %p225_p9 = pnand %p224_p8, %p218_p5 }
  0x17   :  { %228 = shalt.err (!%p225_p9)
}
  0x18   :  { %33 = dma.hbm_to_vmem [thread:$0]  %s296_s1, 512, %s28_s17, [#allocation7], %s256_s12, %s256_s12, %s257_s13  }
  0x19   :  { %249 = dma.done.wait [#allocation4], 256  }
  0x1a   :  { %250 = vsyncadd [#allocation4], 4294967040 }
  0x1b   :  { %251 = dma.done.wait [#allocation7], 512  }
  0x1c   :  { %252 = vsyncadd [#allocation7], 4294966784  ;;  %vm54_vm0 = vcmask 261120   ;;  %v53_v0 = vld [vmem:[#allocation6 + $0x18] sm:$0xff]  ;;  %v52_v1 = vld [vmem:[#allocation6 + $0x10] sm:$0xff]  ;;  %s259_s0 = smov [#allocation8]  }
  0x1d   :  { %173 = vmatprep.subr.mxu0 %v53_v0  ;;  %v48_v2 = vld [vmem:[#allocation3] sm:$0xff]  ;;  %v51_v3 = vld [vmem:[#allocation6 + $0x8] sm:$0xff]  ;;  %v50_v4 = vld [vmem:[#allocation6] sm:$0xff]  ;;  %s152_s1 = sshll.u32 %s259_s0, 4  ;;  %s153_s1 = int_to_ptr.vmem [resolvable:$true] %s152_s1 }
  0x1e   :  { %174 = vmatpush3.msra.mxu0 %v53_v0  ;;  %181 = vmatprep.mubr.msk.f32.mxu0 %vm54_vm0, %v48_v2  ;;  %v49_v5 = vld [vmem:[#allocation3 + $0x8] sm:$0xff]  ;;  %s229_s21 = scalar_lea.vmem %s153_s1, 256  ;;  %p234_p11 = scmp.lt.s32.totalorder %s153_s1, %s153_s1 }
  0x1f   :  { %175 = vmatprep.subr.mxu0 %v52_v1  ;;  %p230_p10 = scmp.ne.s32.totalorder %s153_s1, %s229_s21  ;;  %p235_p12 = scmp.lt.s32.totalorder %s229_s21, %s229_s21 }
  0x20   :  { %176 = vmatpush3.msra.mxu0 %v52_v1 }
  0x21   :  { %177 = vmatprep.subr.mxu0 %v51_v3  ;;  %p236_p13 = por %p235_p12, %p234_p11 }
  0x22   :  { %178 = vmatpush3.msra.mxu0 %v51_v3 }
  0x23   :  { %179 = vmatprep.subr.mxu0 %v50_v4  ;;  %p237_p0 = pnand %p236_p13, %p230_p10 }
  0x24   :  { %180 = vmatpush3.msra.mxu0 %v50_v4 }
  0x25   :  { %182 = vmatmul.mubr.msk.f32.vlgmr.msra.gmra.mxu0 %vm54_vm0, %v49_v5 }
  0xe5   :  { %v183_v6 = vpop.f32.mrf.mxu0 }
  0xe6   :  { %146 = vst [vmem:[#allocation8 + $0x8] sm:$0xff] %v183_v6 }
  0xe7   :  { %v127_v7 = vpop.f32.mrf.mxu0 }
  0xe8   :  { %145 = vst [vmem:[#allocation8] sm:$0xff] %v127_v7 }
  0xe9   :  { %240 = shalt.err (!%p237_p0)
}
  0xea   :  { %158 = dma.vmem_to_hbm [thread:$0]  %s153_s1, 256, %s297_s2, [#allocation5], %s256_s12, %s256_s12, %s257_s13  }
  0xeb   :  { %253 = dma.done.wait [#allocation5], 256  }
  0xec   :  { %254 = vsyncadd [#allocation5], 4294967040 }
  0xed   :  { %162 = vsyncpa [#allocation4], 1 }
  0xee   :  { %163 = vsyncpa [#allocation7], 1 }
  0xef   :  { %164 = vsyncpa [#allocation5], 1 }

</bundles_post_ra>
